<compile_context>
chip_gen: v7x
topology: tpu7x:2x2x1
jax: 0.10.0
libtpu: 0.0.40
codegen_flags: <defaults>
</compile_context>

<pallas_src>
import functools

import jax
import jax.numpy as jnp
from jax.experimental import pallas as pl
from jax.experimental.pallas import tpu as pltpu

LANE = 128
_VMEM_LIMIT = 48 * 1024 * 1024            # headroom under v7x's 64 MiB physical VMEM
_SINGLE_PASS_VMEM_BUDGET = 24 * 1024 * 1024


def _round_up(x, m):
    return (x + m - 1) // m * m


# --------------------------- kernels ---------------------------------------

def _fused_single_kernel(a_ref, x_ref, w_ref, b_ref, o_ref, *, apply_relu):
    # o_i = act( A_i @ (X @ W) + b )   -- X / W / b VMEM-resident, A row panel streamed.
    p = jnp.dot(x_ref[...], w_ref[...], preferred_element_type=jnp.float32)
    p = p.astype(a_ref.dtype)
    h = jnp.dot(a_ref[...], p, preferred_element_type=jnp.float32) + b_ref[...]
    if apply_relu:
        h = jnp.maximum(h, 0.0)
    o_ref[...] = h.astype(o_ref.dtype)


def _fused_tiled_kernel(a_ref, x_ref, w_ref, b_ref, o_ref, acc_ref, *, apply_relu):
    # o_i = act( sum_k A_ik @ (X_k @ W) + b )
    k = pl.program_id(1)

    @pl.when(k == 0)
    def _():
        acc_ref[...] = jnp.zeros_like(acc_ref)

    p = jnp.dot(x_ref[...], w_ref[...], preferred_element_type=jnp.float32)
    p = p.astype(a_ref.dtype)
    acc_ref[...] += jnp.dot(a_ref[...], p, preferred_element_type=jnp.float32)

    @pl.when(k == pl.num_programs(1) - 1)
    def _():
        h = acc_ref[...] + b_ref[...]               # f32 epilogue (v5e-safe)
        if apply_relu:
            h = jnp.maximum(h, 0.0)
        o_ref[...] = h.astype(o_ref.dtype)


# --------------------------- pallas_call wrappers ---------------------------

def _fused_layer_single(a_pad, x_pad, w_pad, b_pad, *, tm, apply_relu, out_dtype):
    n_pad = a_pad.shape[0]
    f = x_pad.shape[1]
    hp = w_pad.shape[1]
    itm = a_pad.dtype.itemsize
    cost = pl.CostEstimate(
        flops=2 * n_pad * n_pad * hp + 2 * (n_pad // tm) * n_pad * f * hp,
        transcendentals=0,
        bytes_accessed=(a_pad.size * itm + x_pad.size * itm
                        + w_pad.size * itm
                        + n_pad * hp * jnp.dtype(out_dtype).itemsize))
    return pl.pallas_call(
        functools.partial(_fused_single_kernel, apply_relu=apply_relu),
        out_shape=jax.ShapeDtypeStruct((n_pad, hp), out_dtype),
        grid_spec=pltpu.PrefetchScalarGridSpec(
            num_scalar_prefetch=0,
            grid=(n_pad // tm,),
            in_specs=[
                pl.BlockSpec((tm, n_pad), lambda i: (i, 0)),   # A row panel (streamed)
                pl.BlockSpec((n_pad, f), lambda i: (0, 0)),    # X resident
                pl.BlockSpec((f, hp), lambda i: (0, 0)),       # W resident
                pl.BlockSpec((1, hp), lambda i: (0, 0)),       # bias resident
            ],
            out_specs=pl.BlockSpec((tm, hp), lambda i: (i, 0)),
        ),
        compiler_params=pltpu.CompilerParams(
            dimension_semantics=("parallel",),
            vmem_limit_bytes=_VMEM_LIMIT),
        cost_estimate=cost,
    )(a_pad, x_pad, w_pad, b_pad)


def _fused_layer_tiled(a_pad, x_pad, w_pad, b_pad, *, tm, tk, apply_relu, out_dtype):
    n_pad = a_pad.shape[0]
    f = x_pad.shape[1]
    hp = w_pad.shape[1]
    itm = a_pad.dtype.itemsize
    cost = pl.CostEstimate(
        flops=2 * n_pad * n_pad * hp + 2 * (n_pad // tm) * n_pad * f * hp,
        transcendentals=0,
        bytes_accessed=(a_pad.size * itm
                        + (n_pad // tm) * x_pad.size * itm      # X tiles re-streamed per row block
                        + w_pad.size * itm
                        + n_pad * hp * jnp.dtype(out_dtype).itemsize))
    return pl.pallas_call(
        functools.partial(_fused_tiled_kernel, apply_relu=apply_relu),
        out_shape=jax.ShapeDtypeStruct((n_pad, hp), out_dtype),
        grid_spec=pltpu.PrefetchScalarGridSpec(
            num_scalar_prefetch=0,
            grid=(n_pad // tm, n_pad // tk),
            in_specs=[
                pl.BlockSpec((tm, tk), lambda i, k: (i, k)),   # A tile (dominant stream)
                pl.BlockSpec((tk, f), lambda i, k: (k, 0)),    # X tile (f=32 wide, cheap)
                pl.BlockSpec((f, hp), lambda i, k: (0, 0)),    # W resident
                pl.BlockSpec((1, hp), lambda i, k: (0, 0)),    # bias resident
            ],
            out_specs=pl.BlockSpec((tm, hp), lambda i, k: (i, 0)),
            scratch_shapes=[pltpu.VMEM((tm, hp), jnp.float32)],
        ),
        compiler_params=pltpu.CompilerParams(
            dimension_semantics=("parallel", "arbitrary"),
            vmem_limit_bytes=_VMEM_LIMIT),
        cost_estimate=cost,
    )(a_pad, x_pad, w_pad, b_pad)


# --------------------------- forward pass -----------------------------------

def padded_size(n, tm, tk):
    assert tm % LANE == 0 and tk % LANE == 0
    big, small = max(tm, tk), min(tm, tk)
    assert big % small == 0, "pick tm/tk so one divides the other (avoids pad blow-up)"
    return _round_up(n, big)


def prepare_adjacency(a_norm, n_pad, dtype=jnp.bfloat16):
    """Pad + cast the normalized adjacency ONCE (cache across forward calls)."""
    n = a_norm.shape[0]
    return jnp.zeros((n_pad, n_pad), dtype).at[:n, :n].set(a_norm.astype(dtype))


def gcn_net_forward(a_pad, x, w1, b1, w2, b2, *, num_nodes, tm=512, tk=512,
                    single_pass=None, compute_dtype=jnp.bfloat16):
    n = num_nodes
    n_pad = a_pad.shape[0]
    f = x.shape[1]
    h = w1.shape[1]
    l = w2.shape[1]
    assert n_pad == padded_size(n, tm, tk) and n_pad % tm == 0 and n_pad % tk == 0

    hp = _round_up(h, LANE)                # lane-dense hidden width
    lp = _round_up(l, LANE)                # lane-dense label width
    cd = compute_dtype

    if single_pass is None:
        # streamed A row panel (double-buffered) + resident X must fit comfortably
        vmem_est = 2 * tm * n_pad * 2 + n_pad * max(f, hp) * 2
        single_pass = vmem_est <= _SINGLE_PASS_VMEM_BUDGET

    # zero-pad activations / params to block-aligned, lane-dense shapes
    x_p = jnp.zeros((n_pad, f), cd).at[:n, :].set(x.astype(cd))
    w1_p = jnp.zeros((f, hp), cd).at[:, :h].set(w1.astype(cd))
    b1_p = jnp.zeros((1, hp), jnp.float32).at[:, :h].set(
        b1.reshape(1, h).astype(jnp.float32))
    w2_p = jnp.zeros((hp, lp), cd).at[:h, :l].set(w2.astype(cd))
    b2_p = jnp.zeros((1, lp), jnp.float32).at[:, :l].set(
        b2.reshape(1, l).astype(jnp.float32))

    if single_pass:
        layer = functools.partial(_fused_layer_single, tm=tm)
    else:
        layer = functools.partial(_fused_layer_tiled, tm=tm, tk=tk)

    # layer 0: H1 = relu(A (X W1) + b1)   (padded H1 rows are harmless: A's
    # padded columns are zero, so they never reach visible outputs)
    h1 = layer(a_pad, x_p, w1_p, b1_p, apply_relu=True, out_dtype=cd)
    # layer 1: out = A (H1 W2) + b2
    out = layer(a_pad, h1, w2_p, b2_p, apply_relu=False, out_dtype=jnp.float32)

    return out[:n, :l]


def build_normalized_adjacency(adj):
    # DGL GraphConv norm='both': D^{-1/2} A D^{-1/2}, degrees clamped to >= 1
    deg = jnp.maximum(adj.sum(axis=1), 1.0)
    d_inv_sqrt = 1.0 / jnp.sqrt(deg)
    return adj * d_inv_sqrt[:, None] * d_inv_sqrt[None, :]


def _reference(a_norm, x, w1, b1, w2, b2, compute_dtype=jnp.bfloat16):
    # Pure-JAX reference with the same bf16 casts + f32 accumulation path.
    cd = compute_dtype
    a = a_norm.astype(cd)
    p1 = jnp.dot(x.astype(cd), w1.astype(cd),
                 preferred_element_type=jnp.float32).astype(cd)
    h1 = jnp.maximum(
        jnp.dot(a, p1, preferred_element_type=jnp.float32) + b1.reshape(1, -1),
        0.0).astype(cd)
    p2 = jnp.dot(h1, w2.astype(cd),
                 preferred_element_type=jnp.float32).astype(cd)
    return jnp.dot(a, p2, preferred_element_type=jnp.float32) + b2.reshape(1, -1)


if __name__ == "__main__":
    key = jax.random.PRNGKey(0)
    k_adj, k_x, k_w1, k_w2 = jax.random.split(key, 4)

    N = 256            # number of graph nodes
    FEAT = 32          # feature_number
    HID = 16           # fixed hidden size in Gcn_Net
    LABEL = 8          # label_number

    # Deterministic symmetric adjacency (no self loops), dense representation.
    a_rand = jax.random.uniform(k_adj, (N, N))
    adj = (a_rand < 0.1).astype(jnp.float32)
    adj = jnp.maximum(adj, adj.T)
    adj = adj * (1.0 - jnp.eye(N, dtype=jnp.float32))
    a_norm = build_normalized_adjacency(adj)

    x = jax.random.normal(k_x, (N, FEAT), dtype=jnp.float32)

    # Glorot-uniform weights (DGL default), zero biases.
    def glorot(k, shape):
        lim = jnp.sqrt(6.0 / (shape[0] + shape[1]))
        return jax.random.uniform(k, shape, jnp.float32, -lim, lim)

    w1 = glorot(k_w1, (FEAT, HID))
    b1 = jnp.zeros((1, HID), jnp.float32)
    w2 = glorot(k_w2, (HID, LABEL))
    b2 = jnp.zeros((1, LABEL), jnp.float32)

    # tm=128, tk=256 at N=256 -> 2 row blocks, so both v7x TensorCores get work.
    TM, TK = 128, 256
    n_pad = padded_size(N, TM, TK)
    a_pad = prepare_adjacency(a_norm, n_pad)          # hoisted pad+cast (cacheable)
    a_pad = jax.block_until_ready(a_pad)

    out_ref = _reference(a_norm, x, w1, b1, w2, b2)

    # Path 1: single-pass fused row-panel kernel (small-graph fast path).
    out_single = gcn_net_forward(a_pad, x, w1, b1, w2, b2, num_nodes=N,
                                 tm=TM, tk=TK, single_pass=True)
    out_single = jax.block_until_ready(out_single)
    assert out_single.shape == (N, LABEL)
    assert jnp.allclose(out_single, out_ref, atol=5e-3, rtol=5e-3), (
        float(jnp.max(jnp.abs(out_single - out_ref))))

    # Path 2: tiled k-reduction fused kernel (large-graph path, exercised here
    # at small N for coverage; defaults are tm=tk=512 for big graphs).
    out_tiled = gcn_net_forward(a_pad, x, w1, b1, w2, b2, num_nodes=N,
                                tm=TM, tk=TK, single_pass=False)
    out_tiled = jax.block_until_ready(out_tiled)
    assert out_tiled.shape == (N, LABEL)
    assert jnp.allclose(out_tiled, out_ref, atol=5e-3, rtol=5e-3), (
        float(jnp.max(jnp.abs(out_tiled - out_ref))))

    print("KERNEL_OK")
</pallas_src>

<mosaic_0001>
module attributes {stable_mosaic.version = 11 : i64} {
  func.func @_fused_single_kernel(%arg0: i32, %arg1: memref<128x256xbf16, #tpu.memory_space<vmem>>, %arg2: memref<256x32xbf16, #tpu.memory_space<vmem>>, %arg3: memref<32x128xbf16, #tpu.memory_space<vmem>>, %arg4: memref<1x128xf32, #tpu.memory_space<vmem>>, %arg5: memref<128x128xbf16, #tpu.memory_space<vmem>>) attributes {dimension_semantics = [#tpu.dimension_semantics<parallel>], iteration_bounds = array<i64: 2>, scalar_prefetch = 0 : i64, scratch_operands = 0 : i64, tpu.core_type = #tpu.core_type<tc>, window_params = [{transform_indices = @transform_0, window_bounds = array<i64: 128, 256>}, {pipeline_mode = #tpu.pipeline_mode<synchronous>, transform_indices = @transform_1, window_bounds = array<i64: 256, 32>}, {pipeline_mode = #tpu.pipeline_mode<synchronous>, transform_indices = @transform_2, window_bounds = array<i64: 32, 128>}, {pipeline_mode = #tpu.pipeline_mode<synchronous>, transform_indices = @transform_3, window_bounds = array<i64: 1, 128>}, {transform_indices = @transform_4, window_bounds = array<i64: 128, 128>}]} {
    %c0 = arith.constant 0 : index
    %c0_0 = arith.constant 0 : index
    %0 = vector.load %arg2[%c0, %c0_0] : memref<256x32xbf16, #tpu.memory_space<vmem>>, vector<256x32xbf16>
    %c0_1 = arith.constant 0 : index
    %c0_2 = arith.constant 0 : index
    %1 = vector.load %arg3[%c0_1, %c0_2] : memref<32x128xbf16, #tpu.memory_space<vmem>>, vector<32x128xbf16>
    %cst = arith.constant dense<0.000000e+00> : vector<256x128xf32>
    %2 = tpu.matmul %0, %1, %cst {dimension_numbers = #tpu.dot_dimension_numbers<[1], [0], [0], [1], [0, 0, 1, 1], [], []>} : vector<256x32xbf16>, vector<32x128xbf16>, vector<256x128xf32> -> vector<256x128xf32>
    %3 = arith.truncf %2 : vector<256x128xf32> to vector<256x128xbf16>
    %c0_3 = arith.constant 0 : index
    %c0_4 = arith.constant 0 : index
    %4 = vector.load %arg1[%c0_3, %c0_4] : memref<128x256xbf16, #tpu.memory_space<vmem>>, vector<128x256xbf16>
    %cst_5 = arith.constant dense<0.000000e+00> : vector<128x128xf32>
    %5 = tpu.matmul %4, %3, %cst_5 {dimension_numbers = #tpu.dot_dimension_numbers<[1], [0], [0], [1], [0, 0, 1, 1], [], []>} : vector<128x256xbf16>, vector<256x128xbf16>, vector<128x128xf32> -> vector<128x128xf32>
    %c0_6 = arith.constant 0 : index
    %c0_7 = arith.constant 0 : index
    %6 = vector.load %arg4[%c0_6, %c0_7] : memref<1x128xf32, #tpu.memory_space<vmem>>, vector<1x128xf32>
    %7 = vector.broadcast %6 : vector<1x128xf32> to vector<128x128xf32>
    %8 = arith.addf %5, %7 : vector<128x128xf32>
    %cst_8 = arith.constant 0.000000e+00 : f32
    %9 = vector.broadcast %cst_8 : f32 to vector<128x128xf32>
    %10 = arith.maximumf %8, %9 : vector<128x128xf32>
    %11 = arith.truncf %10 : vector<128x128xf32> to vector<128x128xbf16>
    %c0_9 = arith.constant 0 : index
    %c0_10 = arith.constant 0 : index
    %12 = vector.load %arg5[%c0_9, %c0_10] : memref<128x128xbf16, #tpu.memory_space<vmem>>, vector<128x128xbf16>
    tpu.vector_store %arg5[%c0_9, %c0_10], %11 {strides = array<i32>} : memref<128x128xbf16, #tpu.memory_space<vmem>>, vector<128x128xbf16>,
    return
  }
  func.func @transform_0(%arg0: i32) -> (i32, i32) {
    %c0_i32 = arith.constant 0 : i32
    %c0_i32_0 = arith.constant 0 : i32
    return %arg0, %c0_i32 : i32, i32
  }
  func.func @transform_1(%arg0: i32) -> (i32, i32) {
    %c0_i32 = arith.constant 0 : i32
    %c0_i32_0 = arith.constant 0 : i32
    %c0_i32_1 = arith.constant 0 : i32
    return %c0_i32, %c0_i32_0 : i32, i32
  }
  func.func @transform_2(%arg0: i32) -> (i32, i32) {
    %c0_i32 = arith.constant 0 : i32
    %c0_i32_0 = arith.constant 0 : i32
    %c0_i32_1 = arith.constant 0 : i32
    return %c0_i32, %c0_i32_0 : i32, i32
  }
  func.func @transform_3(%arg0: i32) -> (i32, i32) {
    %c0_i32 = arith.constant 0 : i32
    %c0_i32_0 = arith.constant 0 : i32
    %c0_i32_1 = arith.constant 0 : i32
    return %c0_i32, %c0_i32_0 : i32, i32
  }
  func.func @transform_4(%arg0: i32) -> (i32, i32) {
    %c0_i32 = arith.constant 0 : i32
    %c0_i32_0 = arith.constant 0 : i32
    return %arg0, %c0_i32 : i32, i32
  }
}

</mosaic_0001>

<bundles_post_ra>
// kernel: tpu_custom_call.1
= control target key start
LH: loop header
LB: loop body
LE: loop exit
PB: predicated region body
PF: predicated region fallthrough
CT: control target
= control target key end

     0   :  { %9 = vsyncpa [#allocation3], 0  ;;  %s1743_s0 = inlined_call_operand.hbm [shape: bf16[256,256], index: 0, kind: input, shape index: {}]   ;;  %s1744_s1 = inlined_call_operand.vmem [shape: bf16[256,32], index: 1, kind: input, shape index: {}]   ;;  %s1745_s2 = inlined_call_operand.vmem [shape: bf16[32,128], index: 2, kind: input, shape index: {}]   ;;  %s1746_s3 = inlined_call_operand.vmem [shape: f32[1,128], index: 3, kind: input, shape index: {}]   ;;  %s1747_s4 = inlined_call_operand.hbm [shape: bf16[256,128], index: 4, kind: output, shape index: {}]  }
   0x1   :  { %11 = vsyncpa [#allocation3 + $0x1], 0 }
   0x2   :  { %12 = vsyncpa [#allocation4], 0 }
   0x3   :  { %14 = vsyncpa [#allocation4 + $0x1], 0  ;;  %s1460_s15 = smov 0   ;;  %s1462_s16 = smov 0  }
   0x4   :  { %s1464_s17 = smov 0   ;;  %s1466_s18 = smov 0  }
   0x5 LB: > { %s1481_s19 = sadd.s32 4294967295, %s1427_s18   ;;  %s957_s20 = sadd.s32 4294967294, %s1427_s18   ;;  %s1427_s18 = sphi %s1466_s18, %s1760_s18   ;;  %s1423_s17 = sphi %s1464_s17, %s1759_s17   ;;  %s1419_s16 = sphi %s1462_s16, %s1758_s16   ;;  %s1415_s15 = sphi %s1460_s15, %s1757_s15  }
   0x6   : > { %s1485_s21 = sadd.s32 1, %s1427_s18   ;;  %s27_s22 = sadd.s32 1, %s1423_s17 }
   0x7   : > { %s24_s23 = ssub.s32 %s1427_s18, %s1485_s21  ;;  %p34_p0 = scmp.ne.s32.totalorder %s1423_s17, %s1419_s16 }
   0x8   : > { %p25_p1 = scmp.eq.s32.totalorder %s24_s23, 0  ;;  %p35_p2 = scmp.eq.s32.totalorder %s1427_s18, 0 }
   0x9   : > { %p40_p3 = scmp.ne.s32.totalorder %s1419_s16, %s1415_s15  ;;  %p41_p4 = scmp.eq.s32.totalorder %s1481_s19, 0 }
   0xa   : > { %s1497_s24 = scalar_select %p25_p1, %s1423_s17, %s27_s22  }
   0xb   : > { %p1499_p5 = por %p35_p2, %p34_p0  ;;  %p1503_p6 = por %p41_p4, %p40_p3 }
   0xc   : > { %p127_p7 = scmp.eq.s32.totalorder %s1481_s19, 1  ;;  %p133_p8 = scmp.eq.s32.totalorder %s957_s20, 1 }
   0xd   : > { %p1251_p10 = scmp.lt.s32.totalorder %s1427_s18, 2  ;;  %s162_s29 = sand.u32 1, %s1423_s17  }
   0xe   : > { %p1510_p11 = por %p127_p7, %p34_p0  ;;  %p1514_p12 = por %p133_p8, %p40_p3 }
   0xf   : > { %s1040_s30 = sshll.u32 %s1427_s18, 11  ;;  %s960_s5 = sshll.u32 %s162_s29, 7 }
  0x10   : > { %s1751_s27 = scalar_select %p1510_p11, 1, 0 }
  0x11   : > { %s1752_s28 = scalar_select %p1514_p12, 1, 0 }
  0x12   : > { %s1523_s8 = scalar_lea.hbm %s1743_s0, %s1040_s30  ;;  %s166_s9 = scalar_lea.vmem [#allocation2], %s960_s5 }
  0x13   : > { %s174_s10 = sshll.u32 %s166_s9, 4  ;;  %p1527_p13 = pnand %p1251_p10, %p1499_p5  ;;  %s1531_s10 = int_to_ptr.vmem [resolvable:$true] %s174_s10 }
  0x14   : > { %s1533_s12 = scalar_lea.sflag [#allocation3], %s162_s29  ;;  %s1331_s13 = scalar_lea.hbm %s1523_s8, 2048 }
  0x15   : > { %p1332_p0 = scmp.ne.s32.totalorder %s1523_s8, %s1331_s13  ;;  %p1333_p1 = pneg %p1527_p13 }
  0x16   : > { %s1336_s22 = scalar_lea.hbm %s1743_s0, 4096  ;;  %p1337_p4 = scmp.lt.u32.totalorder %s1523_s8, %s1743_s0 }
  0x17   : > { %p1334_p2 = pnand %p1333_p1, %p1332_p0  ;;  %p1338_p5 = scmp.lt.u32.totalorder %s1336_s22, %s1331_s13 }
  0x18   : > { %p1340_p8 = scmp.lt.u32.totalorder %s1331_s13, %s1523_s8 }
  0x19   : > { %p1335_p3 = pneg %p1334_p2  ;;  %p1339_p7 = por %p1338_p5, %p1337_p4 }
  0x1b   : > { %p1341_p10 = por %p1340_p8, %p1339_p7 }
  0x1d   : > { %p1342_p9 = pnand %p1341_p10, %p1335_p3 }
  0x1f   : > { %1345 = shalt.err (!%p1342_p9)
}
  0x20   : > { %s1346_s29 = scalar_lea.vmem %s1531_s10, 2048  ;;  %s1429_s30 = smov [#allocation2]  }
  0x21   : > { %p1347_p0 = scmp.ne.s32.totalorder %s1531_s10, %s1346_s29  ;;  %s1351_s5 = sshll.u32 %s1429_s30, 4  ;;  %s1352_s5 = int_to_ptr.vmem [resolvable:$false] %s1351_s5 }
  0x22   : > { %s1353_s6 = scalar_lea.vmem %s1352_s5, 4096  ;;  %p1354_p11 = scmp.lt.s32.totalorder %s1531_s10, %s1352_s5 }
  0x23   : > { %p1349_p2 = pnand %p1347_p0, %p1333_p1  ;;  %p1355_p4 = scmp.lt.s32.totalorder %s1353_s6, %s1346_s29 }
  0x25   : > { %p1350_p12 = pneg %p1349_p2  ;;  %p1356_p5 = por %p1355_p4, %p1354_p11 }
  0x27   : > { %p1357_p7 = pnand %p1356_p5, %p1350_p12 }
  0x29   : > { %1360 = shalt.err (!%p1357_p7)
}
  0x2a   : > { %s1430_s7 = smov 128   ;;  %s1431_s9 = smov 8  }
  0x2b   : > { %1246 = dma.hbm_to_vmem [thread:$0]  (!%p1527_p13), %s1523_s8, 2048, %s1531_s10, %s1533_s12, %s1430_s7, %s1430_s7, %s1431_s9  }
  0x2c   : > { %p964_p9 = scmp.ge.s32.totalorder %s1427_s18, 1  ;;  %p182_p1 = scmp.lt.s32.totalorder %s1427_s18, 3 }
  0x2e   : > { %p183_p3 = pnand %p964_p9, %p182_p1 }
  0x2f   : > { %s1564_s13 = sand.u32 (!%p183_p3), 1, %s1419_s16  }
  0x30   : > { %186 = sbr.rel (%p183_p3) target bundleno = 632 (0x278), region = 36  ;;  %s965_s14 = sshll.u32 (!%p183_p3), %s1564_s13, 7 }
  0x31   : > { %s189_s20 = scalar_lea.sflag (!%p183_p3), [#allocation3], %s1564_s13  ;;  %s1568_s22 = scalar_lea.vmem (!%p183_p3), [#allocation2], %s965_s14 }
  0x37   : > { %1406 = dma.done.wait (%p1503_p6), %s189_s20, 2048  }
  0x38   : > { %1408 = vsyncadd (%p1503_p6), %s189_s20, 4294965248  ;;  %v1289_v0 = vld [vmem:[%s1745_s2] sm:$0xff]   ;;  %v1290_v1 = vld [vmem:[%s1745_s2 + $0x8] sm:$0xff]   ;;  %vm348_vm0 = vcmask 261120   ;;  %s1057_s5 = sshll.u32 %s1481_s19, 10  ;;  %s871_s20 = scalar_lea.sflag [#allocation4], %s1564_s13 }
  0x39   : > { %1187 = vmatprep.subr.bf16.mxu0 %v1289_v0  ;;  %v1291_v2 = vld [vmem:[%s1744_s1] sm:$0xff]   ;;  %v1292_v3 = vld [vmem:[%s1744_s1 + $0x8] sm:$0xff]   ;;  %v1293_v4 = vld [vmem:[%s1744_s1 + $0x10] sm:$0xff]   ;;  %s1696_s14 = scalar_lea.hbm %s1747_s4, %s1057_s5  ;;  %p1754_p11 = scmp.ne.s32.totalorder %s1751_s27, 0 }
  0x3a   : > { %1188 = vmatpush3.bf16.msra.mxu0 %v1289_v0  ;;  %1191 = vmatprep.mubr.msk.bf16.mxu0 %vm348_vm0, %v1291_v2  ;;  %v1294_v5 = vld [vmem:[%s1744_s1 + $0x18] sm:$0xff]   ;;  %v1295_v6 = vld [vmem:[%s1744_s1 + $0x20] sm:$0xff]   ;;  %v1296_v7 = vld [vmem:[%s1744_s1 + $0x28] sm:$0xff]   ;;  %s1432_s19 = smov [#allocation5]  }
  0x3b   : > { %1189 = vmatprep.subr.bf16.mxu0 %v1290_v1  ;;  %v1297_v8 = vld [vmem:[%s1744_s1 + $0x30] sm:$0xff]   ;;  %v1298_v9 = vld [vmem:[%s1744_s1 + $0x38] sm:$0xff]   ;;  %v1299_v10 = vld [vmem:[%s1744_s1 + $0x40] sm:$0xff]   ;;  %s1365_s10 = sshll.u32 %s1432_s19, 4  ;;  %s1366_s10 = int_to_ptr.vmem [resolvable:$false] %s1365_s10 }
  0x3c   : > { %v1300_v11 = vld [vmem:[%s1744_s1 + $0x48] sm:$0xff]   ;;  %v1301_v12 = vld [vmem:[%s1744_s1 + $0x50] sm:$0xff]   ;;  %v1302_v13 = vld [vmem:[%s1744_s1 + $0x58] sm:$0xff]   ;;  %s1367_s11 = scalar_lea.vmem %s1366_s10, 2048 }
  0x3d   : > { %v1303_v14 = vld [vmem:[%s1744_s1 + $0x60] sm:$0xff]   ;;  %v1304_v15 = vld [vmem:[%s1744_s1 + $0x68] sm:$0xff]   ;;  %v1305_v16 = vld [vmem:[%s1744_s1 + $0x70] sm:$0xff]  }
  0x3e   : > { %1190 = vmatpush3.bf16.msra.mxu0 %v1290_v1  ;;  %v1306_v17 = vld [vmem:[%s1744_s1 + $0x78] sm:$0xff]   ;;  %v1327_v19 = vld [vmem:[%s1568_s22 + $0x4] ss:$8 sps:$4 sm:$0xff]  }
  0x3f   : > { %v1309_v18 = vld [vmem:[%s1568_s22 + $0x14] ss:$8 sps:$4 sm:$0xff]  }
  0x40   : > { %717 = vmatprep.mubr.bf16.mxu1 %v1309_v18 }
  0x41   : > { %1192 = vmatmul.mubr.msk.bf16.vlgmr.msra.gmra.mrb[0].mxu0 %vm348_vm0, %v1292_v3 }
  0x42   : > { %1195 = vmatprep.mubr.msk.bf16.mxu0 %vm348_vm0, %v1293_v4  ;;  %v1307_v4 = vld [vmem:[%s1568_s22 + $0x10] ss:$8 sps:$4 sm:$0xff]  }
  0x49   : > { %1196 = vmatmul.mubr.msk.bf16.gmra.mrb[4].mxu0 %vm348_vm0, %v1294_v5  ;;  %v1325_v5 = vld [vmem:[%s1568_s22] ss:$8 sps:$4 sm:$0xff]  }
  0x4a   : > { %1199 = vmatprep.mubr.msk.bf16.mxu0 %vm348_vm0, %v1295_v6  ;;  %v1310_v6 = vld [vmem:[%s1568_s22 + $0x24] ss:$8 sps:$4 sm:$0xff]  }
  0x51   : > { %1200 = vmatmul.mubr.msk.bf16.gmra.mrb[8].mxu0 %vm348_vm0, %v1296_v7  ;;  %v1312_v7 = vld [vmem:[%s1568_s22 + $0x20] ss:$8 sps:$4 sm:$0xff]  }
  0x52   : > { %1203 = vmatprep.mubr.msk.bf16.mxu0 %vm348_vm0, %v1297_v8  ;;  %v1313_v8 = vld [vmem:[%s1568_s22 + $0x34] ss:$8 sps:$4 sm:$0xff]  }
  0x59   : > { %1204 = vmatmul.mubr.msk.bf16.gmra.mrb[12].mxu0 %vm348_vm0, %v1298_v9  ;;  %v1315_v9 = vld [vmem:[%s1568_s22 + $0x30] ss:$8 sps:$4 sm:$0xff]  }
  0x5a   : > { %1207 = vmatprep.mubr.msk.bf16.mxu0 %vm348_vm0, %v1299_v10  ;;  %v1316_v10 = vld [vmem:[%s1568_s22 + $0x44] ss:$8 sps:$4 sm:$0xff]  }
  0x61   : > { %1208 = vmatmul.mubr.msk.bf16.gmra.mrb[16].mxu0 %vm348_vm0, %v1300_v11  ;;  %v1318_v11 = vld [vmem:[%s1568_s22 + $0x40] ss:$8 sps:$4 sm:$0xff]  }
  0x62   : > { %1211 = vmatprep.mubr.msk.bf16.mxu0 %vm348_vm0, %v1301_v12  ;;  %v1319_v12 = vld [vmem:[%s1568_s22 + $0x54] ss:$8 sps:$4 sm:$0xff]  }
  0x69   : > { %1212 = vmatmul.mubr.msk.bf16.gmra.mrb[20].mxu0 %vm348_vm0, %v1302_v13  ;;  %v1321_v13 = vld [vmem:[%s1568_s22 + $0x50] ss:$8 sps:$4 sm:$0xff]  }
  0x6a   : > { %1215 = vmatprep.mubr.msk.bf16.mxu0 %vm348_vm0, %v1303_v14  ;;  %v1322_v14 = vld [vmem:[%s1568_s22 + $0x64] ss:$8 sps:$4 sm:$0xff]  }
  0x71   : > { %1216 = vmatmul.mubr.msk.bf16.gmra.mrb[24].mxu0 %vm348_vm0, %v1304_v15  ;;  %v1324_v15 = vld [vmem:[%s1568_s22 + $0x60] ss:$8 sps:$4 sm:$0xff]  }
  0x72   : > { %1219 = vmatprep.mubr.msk.bf16.mxu0 %vm348_vm0, %v1305_v16  ;;  %v1328_v16 = vld [vmem:[%s1568_s22 + $0x74] ss:$8 sps:$4 sm:$0xff]  }
  0x79   : > { %1220 = vmatmul.mubr.msk.bf16.gmra.mrb[28].mxu0 %vm348_vm0, %v1306_v17  ;;  %v1330_v17 = vld [vmem:[%s1568_s22 + $0x70] ss:$8 sps:$4 sm:$0xff]   ;;  %s966_s22 = sshll.u32 %s1564_s13, 6 }
  0x7a   : > { %709 = vmatprep.mubr.bf16.mxu0 %v1327_v19  ;;  %s1670_s30 = scalar_lea.vmem [#allocation5], %s966_s22 }
  0x7b   : > { %s884_s6 = sshll.u32 %s1670_s30, 4  ;;  %s1698_s6 = int_to_ptr.vmem [resolvable:$true] %s884_s6 }
  0x7c   : > { %s1361_s8 = scalar_lea.vmem %s1698_s6, 1024  ;;  %p1368_p8 = scmp.lt.s32.totalorder %s1698_s6, %s1366_s10 }
  0x7d   : > { %p1362_p6 = scmp.ne.s32.totalorder %s1698_s6, %s1361_s8  ;;  %p1369_p10 = scmp.lt.s32.totalorder %s1367_s11, %s1361_s8 }
  0x7f   : > { %p1363_p12 = pnand %p1362_p6, %p1754_p11  ;;  %p1370_p0 = por %p1369_p10, %p1368_p8 }
  0x81   : > { %p1364_p13 = pneg %p1363_p12 }
  0x83   : > { %p1371_p2 = pnand %p1370_p0, %p1364_p13 }
 0x114   : > { %v1193_v20 = vpop.f32.mrb[0].mxu0 }
 0x115   : > { %v431_v21 = vpop.f32.mrb[1].mxu0 }
 0x116   : > { %v1194_v22 = vpop.f32.mrb[2].mxu0 }
 0x117   : > { %v559_v23 = vpack.c.bf16 %v1194_v22, %v1193_v20  ;;  %v434_v24 = vpop.f32.mrb[3].mxu0  ;;  %v1663_v20 = vld [vmem:[%s1746_s3] ss:$0 sm:$0xff] }
 0x118   : > { %v558_v25 = vpack.c.bf16 %v434_v24, %v431_v21 }
 0x11c   : > { %v1197_v26 = vpop.f32.mrb[4].mxu0 }
 0x11d   : > { %v447_v27 = vpop.f32.mrb[5].mxu0 }
 0x11e   : > { %v1198_v28 = vpop.f32.mrb[6].mxu0 }
 0x11f   : > { %v561_v29 = vpack.c.bf16 %v1198_v28, %v1197_v26  ;;  %v450_v30 = vpop.f32.mrb[7].mxu0 }
 0x120   : > { %v560_v31 = vpack.c.bf16 %v450_v30, %v447_v27 }
 0x124   : > { %v1201_v32 = vpop.f32.mrb[8].mxu0 }
 0x125   : > { %v463_v33 = vpop.f32.mrb[9].mxu0 }
 0x126   : > { %v1202_v34 = vpop.f32.mrb[10].mxu0 }
 0x127   : > { %v563_v35 = vpack.c.bf16 %v1202_v34, %v1201_v32  ;;  %v466_v36 = vpop.f32.mrb[11].mxu0 }
 0x128   : > { %v562_v37 = vpack.c.bf16 %v466_v36, %v463_v33 }
 0x12c   : > { %v1205_v38 = vpop.f32.mrb[12].mxu0 }
 0x12d   : > { %v479_v39 = vpop.f32.mrb[13].mxu0 }
 0x12e   : > { %v1206_v40 = vpop.f32.mrb[14].mxu0 }
 0x12f   : > { %v565_v41 = vpack.c.bf16 %v1206_v40, %v1205_v38  ;;  %v482_v42 = vpop.f32.mrb[15].mxu0 }
 0x130   : > { %v564_v43 = vpack.c.bf16 %v482_v42, %v479_v39 }
 0x134   : > { %v1209_v44 = vpop.f32.mrb[16].mxu0 }
 0x135   : > { %v495_v45 = vpop.f32.mrb[17].mxu0 }
 0x136   : > { %v1210_v46 = vpop.f32.mrb[18].mxu0 }
 0x137   : > { %v567_v47 = vpack.c.bf16 %v1210_v46, %v1209_v44  ;;  %v498_v48 = vpop.f32.mrb[19].mxu0 }
 0x138   : > { %v566_v49 = vpack.c.bf16 %v498_v48, %v495_v45 }
 0x13a   : > { %1123 = vmatprep.subr.bf16.mxu0 %v566_v49  ;;  %1223 = vmatprep.subr.bf16.mxu1 %v566_v49 }
 0x13b   : > { %1124 = vmatpush3.bf16.msra.mxu0 %v558_v25  ;;  %1231 = vmatpush3.bf16.msra.mxu1 %v558_v25 }
 0x13c   : > { %v1213_v50 = vpop.f32.mrb[20].mxu0  ;;  %1125 = vmatprep.subr.bf16.mxu0 %v567_v47  ;;  %1224 = vmatprep.subr.bf16.mxu1 %v567_v47 }
 0x13d   : > { %v511_v51 = vpop.f32.mrb[21].mxu0 }
 0x13e   : > { %v1214_v52 = vpop.f32.mrb[22].mxu0 }
 0x13f   : > { %v569_v53 = vpack.c.bf16 %v1214_v52, %v1213_v50  ;;  %v514_v54 = vpop.f32.mrb[23].mxu0  ;;  %1126 = vmatpush3.bf16.msra.mxu0 %v559_v23  ;;  %1232 = vmatpush3.bf16.msra.mxu1 %v559_v23 }
 0x140   : > { %v568_v55 = vpack.c.bf16 %v514_v54, %v511_v51 }
 0x142   : > { %1127 = vmatprep.subr.bf16.mxu0 %v568_v55  ;;  %1225 = vmatprep.subr.bf16.mxu1 %v568_v55 }
 0x143   : > { %1128 = vmatpush3.bf16.msra.mxu0 %v560_v31  ;;  %1233 = vmatpush3.bf16.msra.mxu1 %v560_v31 }
 0x144   : > { %v1217_v56 = vpop.f32.mrb[24].mxu0  ;;  %1129 = vmatprep.subr.bf16.mxu0 %v569_v53  ;;  %1226 = vmatprep.subr.bf16.mxu1 %v569_v53 }
 0x145   : > { %v527_v57 = vpop.f32.mrb[25].mxu0 }
 0x146   : > { %v1218_v58 = vpop.f32.mrb[26].mxu0 }
 0x147   : > { %v571_v59 = vpack.c.bf16 %v1218_v58, %v1217_v56  ;;  %v530_v60 = vpop.f32.mrb[27].mxu0  ;;  %1130 = vmatpush3.bf16.msra.mxu0 %v561_v29  ;;  %1234 = vmatpush3.bf16.msra.mxu1 %v561_v29 }
 0x148   : > { %v570_v61 = vpack.c.bf16 %v530_v60, %v527_v57 }
 0x14a   : > { %1131 = vmatprep.subr.bf16.mxu0 %v570_v61  ;;  %1227 = vmatprep.subr.bf16.mxu1 %v570_v61 }
 0x14b   : > { %1132 = vmatpush3.bf16.msra.mxu0 %v562_v37  ;;  %1235 = vmatpush3.bf16.msra.mxu1 %v562_v37 }
 0x14c   : > { %v1221_v62 = vpop.f32.mrb[28].mxu0  ;;  %1133 = vmatprep.subr.bf16.mxu0 %v571_v59  ;;  %1228 = vmatprep.subr.bf16.mxu1 %v571_v59 }
 0x14d   : > { %v543_v63 = vpop.f32.mrb[29].mxu0 }
 0x14e   : > { %v1222_v0 = vpop.f32.mrb[30].mxu0 }
 0x14f   : > { %v573_v1 = vpack.c.bf16 %v1222_v0, %v1221_v62  ;;  %v546_v2 = vpop.f32.mrb[31].mxu0  ;;  %1134 = vmatpush3.bf16.msra.mxu0 %v563_v35  ;;  %1236 = vmatpush3.bf16.msra.mxu1 %v563_v35 }
 0x150   : > { %v572_v3 = vpack.c.bf16 %v546_v2, %v543_v63 }
 0x152   : > { %1135 = vmatprep.subr.bf16.mxu0 %v572_v3  ;;  %1229 = vmatprep.subr.bf16.mxu1 %v572_v3 }
 0x153   : > { %1136 = vmatpush3.bf16.msra.mxu0 %v564_v43  ;;  %1237 = vmatpush3.bf16.msra.mxu1 %v564_v43 }
 0x154   : > { %1137 = vmatprep.subr.bf16.mxu0 %v573_v1  ;;  %1230 = vmatprep.subr.bf16.mxu1 %v573_v1 }
 0x157   : > { %1138 = vmatpush3.bf16.msra.mxu0 %v565_v41  ;;  %1238 = vmatpush3.bf16.msra.mxu1 %v565_v41 }
 0x15a   : > { %718 = vmatmul.mubr.bf16.vlgmr.msra.gmra.mrb[0].mxu1 %v1307_v4  ;;  %710 = vmatmul.mubr.bf16.vlgmr.msra.gmra.mrb[32].mxu0 %v1325_v5 }
 0x15b   : > { %725 = vmatprep.mubr.bf16.mxu1 %v1310_v6 }
 0x162   : > { %726 = vmatmul.mubr.bf16.gmra.mrb[4].mxu1 %v1312_v7 }
 0x163   : > { %733 = vmatprep.mubr.bf16.mxu1 %v1313_v8 }
 0x16a   : > { %734 = vmatmul.mubr.bf16.gmra.mrb[8].mxu1 %v1315_v9 }
 0x16b   : > { %741 = vmatprep.mubr.bf16.mxu1 %v1316_v10 }
 0x172   : > { %742 = vmatmul.mubr.bf16.gmra.mrb[12].mxu1 %v1318_v11 }
 0x173   : > { %749 = vmatprep.mubr.bf16.mxu1 %v1319_v12 }
 0x17a   : > { %750 = vmatmul.mubr.bf16.gmra.mrb[16].mxu1 %v1321_v13 }
 0x17b   : > { %757 = vmatprep.mubr.bf16.mxu1 %v1322_v14 }
 0x182   : > { %758 = vmatmul.mubr.bf16.gmra.mrb[20].mxu1 %v1324_v15 }
 0x183   : > { %765 = vmatprep.mubr.bf16.mxu1 %v1328_v16 }
 0x18a   : > { %766 = vmatmul.mubr.bf16.gmra.mrb[24].mxu1 %v1330_v17 }
 0x22d   : > { %v1145_v18 = vpop.f32.mrb[0].mxu1  ;;  %v1139_v19 = vpop.f32.mrb[32].mxu0 }
 0x22e   : > { %v1146_v21 = vpop.f32.mrb[1].mxu1  ;;  %v1140_v22 = vpop.f32.mrb[33].mxu0 }
 0x22f   : > { %v1147_v23 = vadd.f32 %v1146_v21, %v1145_v18  ;;  %v1148_v24 = vpop.f32.mrb[2].mxu1  ;;  %v1141_v25 = vadd.f32 %v1140_v22, %v1139_v19  ;;  %v1142_v26 = vpop.f32.mrb[34].mxu0 }
 0x230   : > { %v1149_v27 = vpop.f32.mrb[3].mxu1  ;;  %v1143_v28 = vpop.f32.mrb[35].mxu0 }
 0x231   : > { %v720_v29 = vadd.f32 %v1147_v23, %v1663_v20  ;;  %v1150_v30 = vadd.f32 %v1149_v27, %v1148_v24  ;;  %v712_v31 = vadd.f32 %v1141_v25, %v1663_v20  ;;  %v1144_v32 = vadd.f32 %v1143_v28, %v1142_v26 }
 0x233   : > { %v723_v33 = vadd.f32 %v1150_v30, %v1663_v20  ;;  %v774_v34 = vmax.f32 %v712_v31, 0.0  ;;  %v715_v35 = vadd.f32 %v1144_v32, %v1663_v20  ;;  %v776_v36 = vmax.f32 %v720_v29, 0.0 }
 0x235   : > { %v777_v37 = vmax.f32 %v723_v33, 0.0  ;;  %v1151_v38 = vpop.f32.mrb[4].mxu1  ;;  %v775_v39 = vmax.f32 %v715_v35, 0.0 }
 0x236   : > { %v1152_v40 = vpop.f32.mrb[5].mxu1 }
 0x237   : > { %v1066_v41 = vpack.c.bf16 %v777_v37, %v776_v36  ;;  %v1153_v42 = vadd.f32 %v1152_v40, %v1151_v38  ;;  %v1154_v43 = vpop.f32.mrb[6].mxu1  ;;  %v1061_v44 = vpack.c.bf16 %v775_v39, %v774_v34 }
 0x238   : > { %v1155_v45 = vpop.f32.mrb[7].mxu1 }
 0x239   : > { %1098 = vst [vmem:[%s1670_s30 + $0x8] sm:$0xff] %v1066_v41   ;;  %v728_v46 = vadd.f32 %v1153_v42, %v1663_v20  ;;  %v1156_v47 = vadd.f32 %v1155_v45, %v1154_v43  ;;  %1062 = vst [vmem:[%s1670_s30] sm:$0xff] %v1061_v44  }
 0x23b   : > { %v731_v48 = vadd.f32 %v1156_v47, %v1663_v20  ;;  %v778_v49 = vmax.f32 %v728_v46, 0.0 }
 0x23d   : > { %v779_v50 = vmax.f32 %v731_v48, 0.0  ;;  %v1157_v51 = vpop.f32.mrb[8].mxu1 }
 0x23e   : > { %v1158_v52 = vpop.f32.mrb[9].mxu1 }
 0x23f   : > { %v1071_v53 = vpack.c.bf16 %v779_v50, %v778_v49  ;;  %v1159_v54 = vadd.f32 %v1158_v52, %v1157_v51  ;;  %v1160_v55 = vpop.f32.mrb[10].mxu1 }
 0x240   : > { %v1161_v56 = vpop.f32.mrb[11].mxu1 }
 0x241   : > { %1099 = vst [vmem:[%s1670_s30 + $0x10] sm:$0xff] %v1071_v53   ;;  %v736_v57 = vadd.f32 %v1159_v54, %v1663_v20  ;;  %v1162_v58 = vadd.f32 %v1161_v56, %v1160_v55 }
 0x243   : > { %v739_v59 = vadd.f32 %v1162_v58, %v1663_v20  ;;  %v780_v60 = vmax.f32 %v736_v57, 0.0 }
 0x245   : > { %v781_v61 = vmax.f32 %v739_v59, 0.0  ;;  %v1163_v62 = vpop.f32.mrb[12].mxu1 }
 0x246   : > { %v1164_v63 = vpop.f32.mrb[13].mxu1 }
 0x247   : > { %v1076_v0 = vpack.c.bf16 %v781_v61, %v780_v60  ;;  %v1165_v1 = vadd.f32 %v1164_v63, %v1163_v62  ;;  %v1166_v2 = vpop.f32.mrb[14].mxu1 }
 0x248   : > { %v1167_v3 = vpop.f32.mrb[15].mxu1 }
 0x249   : > { %1100 = vst [vmem:[%s1670_s30 + $0x18] sm:$0xff] %v1076_v0   ;;  %v744_v4 = vadd.f32 %v1165_v1, %v1663_v20  ;;  %v1168_v5 = vadd.f32 %v1167_v3, %v1166_v2 }
 0x24b   : > { %v747_v6 = vadd.f32 %v1168_v5, %v1663_v20  ;;  %v782_v7 = vmax.f32 %v744_v4, 0.0 }
 0x24d   : > { %v783_v8 = vmax.f32 %v747_v6, 0.0  ;;  %v1169_v9 = vpop.f32.mrb[16].mxu1 }
 0x24e   : > { %v1170_v10 = vpop.f32.mrb[17].mxu1 }
 0x24f   : > { %v1081_v11 = vpack.c.bf16 %v783_v8, %v782_v7  ;;  %v1171_v12 = vadd.f32 %v1170_v10, %v1169_v9  ;;  %v1172_v13 = vpop.f32.mrb[18].mxu1 }
 0x250   : > { %v1173_v14 = vpop.f32.mrb[19].mxu1 }
 0x251   : > { %1101 = vst [vmem:[%s1670_s30 + $0x20] sm:$0xff] %v1081_v11   ;;  %v752_v15 = vadd.f32 %v1171_v12, %v1663_v20  ;;  %v1174_v16 = vadd.f32 %v1173_v14, %v1172_v13 }
 0x253   : > { %v755_v17 = vadd.f32 %v1174_v16, %v1663_v20  ;;  %v784_v18 = vmax.f32 %v752_v15, 0.0 }
 0x255   : > { %v785_v19 = vmax.f32 %v755_v17, 0.0  ;;  %v1175_v21 = vpop.f32.mrb[20].mxu1 }
 0x256   : > { %v1176_v22 = vpop.f32.mrb[21].mxu1 }
 0x257   : > { %v1086_v23 = vpack.c.bf16 %v785_v19, %v784_v18  ;;  %v1177_v24 = vadd.f32 %v1176_v22, %v1175_v21  ;;  %v1178_v25 = vpop.f32.mrb[22].mxu1 }
 0x258   : > { %v1179_v26 = vpop.f32.mrb[23].mxu1 }
 0x259   : > { %1102 = vst [vmem:[%s1670_s30 + $0x28] sm:$0xff] %v1086_v23   ;;  %v760_v27 = vadd.f32 %v1177_v24, %v1663_v20  ;;  %v1180_v28 = vadd.f32 %v1179_v26, %v1178_v25 }
 0x25b   : > { %v763_v29 = vadd.f32 %v1180_v28, %v1663_v20  ;;  %v786_v30 = vmax.f32 %v760_v27, 0.0 }
 0x25d   : > { %v787_v31 = vmax.f32 %v763_v29, 0.0  ;;  %v1181_v32 = vpop.f32.mrb[24].mxu1 }
 0x25e   : > { %v1182_v33 = vpop.f32.mrb[25].mxu1 }
 0x25f   : > { %v1091_v34 = vpack.c.bf16 %v787_v31, %v786_v30  ;;  %v1183_v35 = vadd.f32 %v1182_v33, %v1181_v32  ;;  %v1184_v36 = vpop.f32.mrb[26].mxu1 }
 0x260   : > { %v1185_v37 = vpop.f32.mrb[27].mxu1 }
 0x261   : > { %1103 = vst [vmem:[%s1670_s30 + $0x30] sm:$0xff] %v1091_v34   ;;  %v768_v38 = vadd.f32 %v1183_v35, %v1663_v20  ;;  %v1186_v39 = vadd.f32 %v1185_v37, %v1184_v36 }
 0x263   : > { %v771_v40 = vadd.f32 %v1186_v39, %v1663_v20  ;;  %v788_v41 = vmax.f32 %v768_v38, 0.0 }
 0x265   : > { %v789_v42 = vmax.f32 %v771_v40, 0.0 }
 0x267   : > { %v1096_v43 = vpack.c.bf16 %v789_v42, %v788_v41 }
 0x269   : > { %1104 = vst [vmem:[%s1670_s30 + $0x38] sm:$0xff] %v1096_v43  }
 0x26a   : > { %1374 = shalt.err (!%p1371_p2)
}
 0x26b   : > { %s1375_s12 = scalar_lea.hbm %s1696_s14, 1024  ;;  %s1379_s26 = scalar_lea.hbm %s1747_s4, 2048 }
 0x26c   : > { %p1376_p4 = scmp.ne.s32.totalorder %s1696_s14, %s1375_s12  ;;  %p1380_p9 = scmp.lt.u32.totalorder %s1696_s14, %s1747_s4 }
 0x26d   : > { %p1381_p1 = scmp.lt.u32.totalorder %s1379_s26, %s1375_s12  ;;  %p1383_p6 = scmp.lt.u32.totalorder %s1375_s12, %s1696_s14 }
 0x26e   : > { %p1377_p5 = pnand %p1376_p4, %p1754_p11 }
 0x26f   : > { %p1382_p3 = por %p1381_p1, %p1380_p9 }
 0x270   : > { %p1378_p7 = pneg %p1377_p5 }
 0x271   : > { %p1384_p12 = por %p1383_p6, %p1382_p3 }
 0x273   : > { %p1385_p13 = pnand %p1384_p12, %p1378_p7 }
 0x275   : > { %1388 = shalt.err (!%p1385_p13)
}
 0x276   : > { %s1433_s30 = smov 64   ;;  %s1434_s5 = smov 4  }
 0x277   : > { %1241 = dma.vmem_to_hbm [thread:$0]  (%p1754_p11), %s1698_s6, 1024, %s1696_s14, %s871_s20, %s1433_s30, %s1433_s30, %s1434_s5  }
 0x278 PF: > { %s899_s7 = sand.u32 1, %s1415_s15   ;;  %p1755_p8 = scmp.ne.s32.totalorder %s1752_s28, 0 }
 0x279   : > { %p1756_p10 = scmp.ge.s32.totalorder %s1427_s18, 2  ;;  %s900_s9 = scalar_lea.sflag [#allocation4], %s899_s7 }
 0x27b   : > { %p1248_p0 = pnand %p1756_p10, %p1755_p8 }
 0x27d   : > { %1410 = dma.done.wait (!%p1248_p0), %s900_s9, 1024  }
 0x27e   : > { %1412 = vsyncadd (!%p1248_p0), %s900_s9, 4294966272  ;;  %p17_p2 = scmp.ge.s32.totalorder %s1485_s21, 4   ;;  %s1757_s15 = smov %s1419_s16 }
 0x27f   : > { %s1758_s16 = smov %s1423_s17  ;;  %s1759_s17 = smov %s1497_s24 }
 0x280   : > { %s1760_s18 = smov %s1485_s21  ;;  %19 = sbr.rel (!%p17_p2) target bundleno = 5 (0x5), region = 81 }
 0x287   :  { %905 = vsyncpa [#allocation3], 1 }
 0x288   :  { %907 = vsyncpa [#allocation3 + $0x1], 1 }
 0x289   :  { %908 = vsyncpa [#allocation4], 1 }
 0x28a   :  { %910 = vsyncpa [#allocation4 + $0x1], 1 }

</bundles_post_ra>
